<compile_context>
chip_gen: v6e
topology: v6e:2x2x1
jax: 0.10.0
libtpu: 0.0.40
codegen_flags: <defaults>
</compile_context>

<pallas_src>
import jax
import jax.numpy as jnp
from jax import lax
from jax.experimental import pallas as pl
from jax.experimental.pallas import tpu as pltpu


def _round_up(x, m):
    return (x + m - 1) // m * m


def _tpu_vmem_capacity_bytes():
    """Per-TensorCore VMEM capacity; falls back to the smallest generation (v7x, 64 MiB)."""
    try:
        cap = int(pltpu.get_tpu_info().vmem_capacity_bytes)
        if cap > 0:
            return cap
    except Exception:
        pass
    return 64 * 1024 * 1024


# ---------------------------------------------------------------------------
# Kernels
# ---------------------------------------------------------------------------

def _onehot_matmul_kernel(ids_ref, table_ref, out_ref):
    """Gather as one-hot @ table on the MXU.

    ids_ref:   VMEM (TQ, 1)   int32 token ids for this block
    table_ref: VMEM (Vp, Hp)  full padded embedding table (resident across grid steps)
    out_ref:   VMEM (TQ, Hp)  lane-dense output slab
    """
    tq = out_ref.shape[0]
    vp = table_ref.shape[0]
    ids = ids_ref[...]                                             # (TQ, 1)
    col = lax.broadcasted_iota(jnp.int32, (tq, vp), 1)             # (TQ, Vp) column index
    one_hot = (col == ids).astype(table_ref.dtype)                 # exact 0/1 values
    out_ref[...] = jnp.dot(
        one_hot, table_ref[...], preferred_element_type=jnp.float32
    ).astype(out_ref.dtype)


def _row_copy_kernel(ids_ref, table_ref, out_ref):
    """Fallback for larger vocabularies: per-row VMEM copy, unrolled x8.

    ids_ref:   SMEM (N_pad,)  scalar-prefetched token ids
    table_ref: VMEM (Vp, Hp)  resident table
    out_ref:   VMEM (TQ, Hp)  output slab
    """
    tq = out_ref.shape[0]
    base = pl.program_id(0) * tq

    def body(j, carry):
        idx = ids_ref[base + j]                                    # scalar id from SMEM
        out_ref[pl.ds(j, 1), :] = table_ref[pl.ds(idx, 1), :]
        return carry

    lax.fori_loop(0, tq, body, 0, unroll=8)


# ---------------------------------------------------------------------------
# Wrapper
# ---------------------------------------------------------------------------

def token_embedding_forward(input_ids, emb_table, *, block_tokens=512,
                            force_loop_path=False):
    """input_ids: [L, B] int, emb_table: [V, H] -> [L, B, H] (== nn.Embedding forward)."""
    L, B = input_ids.shape
    V, H = emb_table.shape
    N = L * B
    itemsize = jnp.dtype(emb_table.dtype).itemsize

    # Lane/sublane-dense padded table: H -> multiple of 128 (unmasked full-tile stores on
    # the output slab), V -> multiple of 128 (clean contraction / row tiling).  Padding is
    # zeros and is never selected since ids are clipped to [0, V-1].
    Hp = _round_up(H, 128)
    Vp = _round_up(V, 128)
    table_bytes = Vp * Hp * itemsize

    capacity = _tpu_vmem_capacity_bytes()
    # Keep the (possibly double-buffered) resident table well under per-TC VMEM.
    # TODO(synk): for tables exceeding this budget, switch to a manual row-DMA gather
    # (table in memory_space=pl.ANY + pltpu.make_async_copy with several rows in flight).
    assert 2 * table_bytes <= (2 * capacity) // 3, (
        "embedding table too large for the VMEM-resident gather path")

    use_matmul = (not force_loop_path) and (Vp <= 4096)

    table = emb_table
    if (Vp, Hp) != (V, H):
        table = jnp.pad(table, ((0, Vp - V), (0, Hp - H)))

    # Note: clip silently remaps out-of-range ids (PyTorch nn.Embedding would raise);
    # valid inputs are unaffected.
    ids = jnp.clip(input_ids.reshape(-1).astype(jnp.int32), 0, V - 1)   # [N]

    # Tokens per grid step: as large as remaining VMEM allows (amortizes the ~0.35us/step
    # overhead and makes the HBM writeback one large contiguous DMA).
    headroom = 4 * 1024 * 1024
    remaining = max(capacity - 2 * table_bytes - headroom, 1)
    per_token = 2 * Hp * itemsize + (Vp * 4 if use_matmul else 0) + 16
    tq_cap = max(8, (remaining // per_token) // 8 * 8)
    tq = min(_round_up(block_tokens, 8), tq_cap, _round_up(N, 8))
    n_pad = _round_up(N, tq)
    if n_pad != N:
        ids = jnp.pad(ids, (0, n_pad - N))   # pad with id 0 (valid row), sliced off below
    grid = (n_pad // tq,)

    need = (2 * table_bytes                         # resident table (assume 2x buffered)
            + 2 * tq * Hp * itemsize                # output double buffers
            + (tq * Vp * 4 if use_matmul else 0)    # one-hot intermediate
            + 2 * tq * 4                            # ids buffers
            + 2 * 1024 * 1024)                      # scratch headroom
    vmem_limit = int(min(max(need, 16 * 1024 * 1024), capacity))

    cparams = pltpu.CompilerParams(
        # Each (TQ, Hp) output block is independent -> shard across TCs on v7x.
        dimension_semantics=("parallel",),
        vmem_limit_bytes=vmem_limit,
    )
    out_shape = jax.ShapeDtypeStruct((n_pad, Hp), emb_table.dtype)

    if use_matmul:
        out = pl.pallas_call(
            _onehot_matmul_kernel,
            out_shape=out_shape,
            grid_spec=pltpu.PrefetchScalarGridSpec(
                num_scalar_prefetch=0,
                grid=grid,
                in_specs=[
                    pl.BlockSpec((tq, 1), lambda i: (i, 0)),    # ids for this block
                    pl.BlockSpec((Vp, Hp), lambda i: (0, 0)),   # constant -> resident table
                ],
                out_specs=pl.BlockSpec((tq, Hp), lambda i: (i, 0)),
            ),
            compiler_params=cparams,
        )(ids.reshape(n_pad, 1), table)
    else:
        out = pl.pallas_call(
            _row_copy_kernel,
            out_shape=out_shape,
            grid_spec=pltpu.PrefetchScalarGridSpec(
                num_scalar_prefetch=1,
                grid=grid,
                in_specs=[pl.BlockSpec((Vp, Hp), lambda i, ids_ref: (0, 0))],
                out_specs=pl.BlockSpec((tq, Hp), lambda i, ids_ref: (i, 0)),
            ),
            compiler_params=cparams,
        )(ids, table)

    return out[:N, :H].reshape(L, B, H)


if __name__ == "__main__":
    vocab_size = 512
    hidden_size = 32
    seq_len = 8
    batch_size = 2

    key = jax.random.PRNGKey(0)
    k_emb, k_ids, k_ids2 = jax.random.split(key, 3)

    # nn.Embedding weight: [vocab_size, hidden_size], normal(0, 0.02) like _reset_parameters.
    emb_table = 0.02 * jax.random.normal(
        k_emb, (vocab_size, hidden_size), dtype=jnp.float32)

    # input_ids: [seq_len, batch_size]
    input_ids = jax.random.randint(
        k_ids, (seq_len, batch_size), 0, vocab_size, dtype=jnp.int32)

    out = jax.block_until_ready(token_embedding_forward(input_ids, emb_table))
    ref = jnp.take(emb_table, input_ids, axis=0)                  # [L, B, H]
    assert out.shape == (seq_len, batch_size, hidden_size), out.shape
    assert jnp.allclose(out, ref), "mismatch vs reference gather (small case)"

    # Larger token count -> exercises padding + multiple grid steps (N=300, tq=128,
    # grid=3) with the table staying VMEM-resident across steps (one-hot matmul path).
    L2, B2 = 100, 3
    input_ids2 = jax.random.randint(k_ids2, (L2, B2), 0, vocab_size, dtype=jnp.int32)
    out2 = jax.block_until_ready(
        token_embedding_forward(input_ids2, emb_table, block_tokens=128))
    ref2 = jnp.take(emb_table, input_ids2, axis=0)
    assert out2.shape == (L2, B2, hidden_size), out2.shape
    assert jnp.allclose(out2, ref2), "mismatch vs reference gather (matmul path, multi-step)"

    # Exercise the large-vocab fallback (unrolled row-copy) path as well.
    out3 = jax.block_until_ready(
        token_embedding_forward(input_ids2, emb_table, block_tokens=128,
                                force_loop_path=True))
    assert jnp.allclose(out3, ref2), "mismatch vs reference gather (row-copy fallback path)"

    print("KERNEL_OK")
</pallas_src>

<mosaic_0001>
module attributes {stable_mosaic.version = 11 : i64} {
  func.func @_onehot_matmul_kernel(%arg0: i32, %arg1: memref<16x1xi32, #tpu.memory_space<vmem>>, %arg2: memref<512x128xf32, #tpu.memory_space<vmem>>, %arg3: memref<16x128xf32, #tpu.memory_space<vmem>>) attributes {dimension_semantics = [#tpu.dimension_semantics<parallel>], iteration_bounds = array<i64: 1>, scalar_prefetch = 0 : i64, scratch_operands = 0 : i64, tpu.core_type = #tpu.core_type<tc>, window_params = [{transform_indices = @transform_0, window_bounds = array<i64: 16, 1>}, {pipeline_mode = #tpu.pipeline_mode<synchronous>, transform_indices = @transform_1, window_bounds = array<i64: 512, 128>}, {transform_indices = @transform_2, window_bounds = array<i64: 16, 128>}]} {
    %c0 = arith.constant 0 : index
    %c0_0 = arith.constant 0 : index
    %0 = vector.load %arg1[%c0, %c0_0] : memref<16x1xi32, #tpu.memory_space<vmem>>, vector<16x1xi32>
    %1 = tpu.iota {dimensions = array<i32: 1>} : vector<16x512xi32>
    %2 = vector.broadcast %0 : vector<16x1xi32> to vector<16x512xi32>
    %3 = arith.cmpi eq, %1, %2 : vector<16x512xi32>
    %4 = arith.extui %3 : vector<16x512xi1> to vector<16x512xi32>
    %5 = arith.sitofp %4 : vector<16x512xi32> to vector<16x512xf32>
    %c0_1 = arith.constant 0 : index
    %c0_2 = arith.constant 0 : index
    %6 = vector.load %arg2[%c0_1, %c0_2] : memref<512x128xf32, #tpu.memory_space<vmem>>, vector<512x128xf32>
    %cst = arith.constant dense<0.000000e+00> : vector<16x128xf32>
    %7 = tpu.matmul %5, %6, %cst {dimension_numbers = #tpu.dot_dimension_numbers<[1], [0], [0], [1], [0, 0, 1, 1], [], []>} : vector<16x512xf32>, vector<512x128xf32>, vector<16x128xf32> -> vector<16x128xf32>
    %c0_3 = arith.constant 0 : index
    %c0_4 = arith.constant 0 : index
    %8 = vector.load %arg3[%c0_3, %c0_4] : memref<16x128xf32, #tpu.memory_space<vmem>>, vector<16x128xf32>
    tpu.vector_store %arg3[%c0_3, %c0_4], %7 {strides = array<i32>} : memref<16x128xf32, #tpu.memory_space<vmem>>, vector<16x128xf32>,
    return
  }
  func.func @transform_0(%arg0: i32) -> (i32, i32) {
    %c0_i32 = arith.constant 0 : i32
    %c0_i32_0 = arith.constant 0 : i32
    return %arg0, %c0_i32 : i32, i32
  }
  func.func @transform_1(%arg0: i32) -> (i32, i32) {
    %c0_i32 = arith.constant 0 : i32
    %c0_i32_0 = arith.constant 0 : i32
    %c0_i32_1 = arith.constant 0 : i32
    return %c0_i32, %c0_i32_0 : i32, i32
  }
  func.func @transform_2(%arg0: i32) -> (i32, i32) {
    %c0_i32 = arith.constant 0 : i32
    %c0_i32_0 = arith.constant 0 : i32
    return %arg0, %c0_i32 : i32, i32
  }
}

</mosaic_0001>

<bundles_post_ra>
// kernel: tpu_custom_call.1
= control target key start
LH: loop header
LB: loop body
LE: loop exit
PB: predicated region body
PF: predicated region fallthrough
CT: control target
= control target key end

     0   :  { %7 = vsyncpa [#allocation3], 0  ;;  %s478_s0 = inlined_call_operand.vmem [shape: s32[16,1], index: 0, kind: input, shape index: {}]   ;;  %s479_s1 = inlined_call_operand.hbm [shape: f32[512,128], index: 1, kind: input, shape index: {}]   ;;  %s480_s2 = inlined_call_operand.hbm [shape: f32[16,128], index: 2, kind: output, shape index: {}]  }
   0x1   :  { %8 = vsyncpa [#allocation4], 0  ;;  %s439_s9 = smov [#allocation2]  }
   0x2   :  { %s16_s10 = sshll.u32 %s439_s9, 4  ;;  %s17_s10 = int_to_ptr.vmem [resolvable:$true] %s16_s10 }
   0x3   :  { %s403_s11 = scalar_lea.vmem %s17_s10, 8192  ;;  %p408_p1 = scmp.lt.s32.totalorder %s17_s10, %s17_s10 }
   0x4   :  { %p404_p0 = scmp.ne.s32.totalorder %s17_s10, %s403_s11  ;;  %p409_p2 = scmp.lt.s32.totalorder %s403_s11, %s403_s11 }
   0x6   :  { %p410_p3 = por %p409_p2, %p408_p1 }
   0x8   :  { %p411_p4 = pnand %p410_p3, %p404_p0 }
   0xa   :  { %414 = shalt.err (!%p411_p4)
}
   0xb   :  { %s440_s12 = smov 128   ;;  %s441_s13 = smov 8  }
   0xc   :  { %22 = dma.hbm_to_vmem [thread:$0]  %s479_s1, 8192, %s17_s10, [#allocation3], %s440_s12, %s440_s12, %s441_s13  }
   0xd   :  { %435 = dma.done.wait [#allocation3], 8192  }
   0xe   :  { %436 = vsyncadd [#allocation3], 4294959104  ;;  %v442_v0 = vmov 0   ;;  %v26_v1 = vld [vmem:[%s478_s0] sm:$0xff]  ;;  %v27_v2 = vld [vmem:[%s478_s0 + $0x8] sm:$0xff]  ;;  %s444_s0 = smov [#allocation5]  }
   0xf   :  { %394 = vset.pattern.permute.xlu0 %v442_v0  ;;  %v94_v3 = vld [vmem:[#allocation2 + $0xf8] sm:$0xff]  ;;  %v93_v7 = vld [vmem:[#allocation2 + $0xf0] sm:$0xff]  ;;  %v92_v11 = vld [vmem:[#allocation2 + $0xe8] sm:$0xff]  ;;  %s284_s1 = sshll.u32 %s444_s0, 4  ;;  %s285_s1 = int_to_ptr.vmem [resolvable:$true] %s284_s1 }
  0x10   :  { %34 = vperm.xlu0 %394, %v26_v1   ;;  %312 = vmatprep.subr.mxu0 %v94_v3  ;;  %v126_v4 = vld [vmem:[#allocation2 + $0x1f8] sm:$0xff]  ;;  %v125_v8 = vld [vmem:[#allocation2 + $0x1f0] sm:$0xff]  ;;  %v124_v12 = vld [vmem:[#allocation2 + $0x1e8] sm:$0xff]  ;;  %v28_v3 = vlaneseq  ;;  %s415_s20 = scalar_lea.vmem %s285_s1, 256  ;;  %p420_p6 = scmp.lt.s32.totalorder %s285_s1, %s285_s1 }
  0x11   :  { %v78_v5 = vld [vmem:[#allocation2 + $0x78] sm:$0xff]  ;;  %350 = vmatprep.subr.mxu1 %v126_v4  ;;  %v77_v9 = vld [vmem:[#allocation2 + $0x70] sm:$0xff]  ;;  %v76_v13 = vld [vmem:[#allocation2 + $0x68] sm:$0xff]  ;;  %p416_p5 = scmp.ne.s32.totalorder %s285_s1, %s415_s20  ;;  %p421_p7 = scmp.lt.s32.totalorder %s415_s20, %s415_s20 }
  0x12   :  { %v110_v6 = vld [vmem:[#allocation2 + $0x178] sm:$0xff]  ;;  %313 = vmatpush3.msra.mxu0 %v78_v5  ;;  %v109_v10 = vld [vmem:[#allocation2 + $0x170] sm:$0xff]  ;;  %v108_v14 = vld [vmem:[#allocation2 + $0x168] sm:$0xff]  ;;  %v29_v4 = vand.u32 127, %v28_v3 }
  0x13   :  { %351 = vmatpush3.msra.mxu1 %v110_v6  ;;  %314 = vmatprep.subr.mxu0 %v93_v7  ;;  %v91_v15 = vld [vmem:[#allocation2 + $0xe0] sm:$0xff]  ;;  %v90_v19 = vld [vmem:[#allocation2 + $0xd8] sm:$0xff]  ;;  %v89_v23 = vld [vmem:[#allocation2 + $0xd0] sm:$0xff]  ;;  %p422_p8 = por %p421_p7, %p420_p6 }
  0x14   :  { %352 = vmatprep.subr.mxu1 %v125_v8  ;;  %315 = vmatpush3.msra.mxu0 %v77_v9  ;;  %v123_v16 = vld [vmem:[#allocation2 + $0x1e0] sm:$0xff]  ;;  %v122_v20 = vld [vmem:[#allocation2 + $0x1d8] sm:$0xff]  ;;  %v121_v24 = vld [vmem:[#allocation2 + $0x1d0] sm:$0xff]  ;;  %v30_v5 = vadd.s32 128, %v29_v4  ;;  %v32_v6 = vadd.s32 384, %v29_v4  ;;  %v31_v7 = vadd.s32 256, %v29_v4 }
  0x15   :  { %37 = vperm.xlu0 %394, %v27_v2   ;;  %353 = vmatpush3.msra.mxu1 %v109_v10  ;;  %v75_v17 = vld [vmem:[#allocation2 + $0x60] sm:$0xff]  ;;  %v74_v21 = vld [vmem:[#allocation2 + $0x58] sm:$0xff]  ;;  %v73_v25 = vld [vmem:[#allocation2 + $0x50] sm:$0xff]  ;;  %v443_v9 = vmov 1.0   ;;  %p423_p9 = pnand %p422_p8, %p416_p5 }
  0x16   :  { %316 = vmatprep.subr.mxu0 %v92_v11  ;;  %354 = vmatprep.subr.mxu1 %v124_v12  ;;  %v107_v18 = vld [vmem:[#allocation2 + $0x160] sm:$0xff]  ;;  %v106_v22 = vld [vmem:[#allocation2 + $0x158] sm:$0xff]  ;;  %v105_v26 = vld [vmem:[#allocation2 + $0x150] sm:$0xff] }
  0x17   :  { %317 = vmatpush3.msra.mxu0 %v76_v13  ;;  %355 = vmatpush3.msra.mxu1 %v108_v14  ;;  %v88_v27 = vld [vmem:[#allocation2 + $0xc8] sm:$0xff]  ;;  %v87_v31 = vld [vmem:[#allocation2 + $0xc0] sm:$0xff]  ;;  %v86_v35 = vld [vmem:[#allocation2 + $0xb8] sm:$0xff] }
  0x18   :  { %318 = vmatprep.subr.mxu0 %v91_v15  ;;  %356 = vmatprep.subr.mxu1 %v123_v16  ;;  %v120_v28 = vld [vmem:[#allocation2 + $0x1c8] sm:$0xff]  ;;  %v119_v32 = vld [vmem:[#allocation2 + $0x1c0] sm:$0xff]  ;;  %v118_v36 = vld [vmem:[#allocation2 + $0x1b8] sm:$0xff] }
  0x19   :  { %319 = vmatpush3.msra.mxu0 %v75_v17  ;;  %357 = vmatpush3.msra.mxu1 %v107_v18  ;;  %v72_v29 = vld [vmem:[#allocation2 + $0x48] sm:$0xff]  ;;  %v71_v33 = vld [vmem:[#allocation2 + $0x40] sm:$0xff]  ;;  %v70_v37 = vld [vmem:[#allocation2 + $0x38] sm:$0xff] }
  0x1a   :  { %320 = vmatprep.subr.mxu0 %v90_v19  ;;  %358 = vmatprep.subr.mxu1 %v122_v20  ;;  %v104_v30 = vld [vmem:[#allocation2 + $0x148] sm:$0xff]  ;;  %v103_v34 = vld [vmem:[#allocation2 + $0x140] sm:$0xff]  ;;  %v102_v38 = vld [vmem:[#allocation2 + $0x138] sm:$0xff] }
  0x1b   :  { %321 = vmatpush3.msra.mxu0 %v74_v21  ;;  %359 = vmatpush3.msra.mxu1 %v106_v22  ;;  %v85_v39 = vld [vmem:[#allocation2 + $0xb0] sm:$0xff]  ;;  %v84_v43 = vld [vmem:[#allocation2 + $0xa8] sm:$0xff]  ;;  %v83_v47 = vld [vmem:[#allocation2 + $0xa0] sm:$0xff] }
  0x1c   :  { %322 = vmatprep.subr.mxu0 %v89_v23  ;;  %360 = vmatprep.subr.mxu1 %v121_v24  ;;  %v117_v40 = vld [vmem:[#allocation2 + $0x1b0] sm:$0xff]  ;;  %v116_v44 = vld [vmem:[#allocation2 + $0x1a8] sm:$0xff]  ;;  %v115_v48 = vld [vmem:[#allocation2 + $0x1a0] sm:$0xff] }
  0x1d   :  { %323 = vmatpush3.msra.mxu0 %v73_v25  ;;  %361 = vmatpush3.msra.mxu1 %v105_v26  ;;  %v69_v41 = vld [vmem:[#allocation2 + $0x30] sm:$0xff]  ;;  %v68_v45 = vld [vmem:[#allocation2 + $0x28] sm:$0xff]  ;;  %v67_v49 = vld [vmem:[#allocation2 + $0x20] sm:$0xff] }
  0x1e   :  { %324 = vmatprep.subr.mxu0 %v88_v27  ;;  %362 = vmatprep.subr.mxu1 %v120_v28  ;;  %v101_v42 = vld [vmem:[#allocation2 + $0x130] sm:$0xff]  ;;  %v100_v46 = vld [vmem:[#allocation2 + $0x128] sm:$0xff]  ;;  %v99_v50 = vld [vmem:[#allocation2 + $0x120] sm:$0xff] }
  0x1f   :  { %325 = vmatpush3.msra.mxu0 %v72_v29  ;;  %363 = vmatpush3.msra.mxu1 %v104_v30  ;;  %v82_v51 = vld [vmem:[#allocation2 + $0x98] sm:$0xff]  ;;  %v81_v55 = vld [vmem:[#allocation2 + $0x90] sm:$0xff]  ;;  %v80_v59 = vld [vmem:[#allocation2 + $0x88] sm:$0xff] }
  0x20   :  { %326 = vmatprep.subr.mxu0 %v87_v31  ;;  %364 = vmatprep.subr.mxu1 %v119_v32  ;;  %v114_v52 = vld [vmem:[#allocation2 + $0x198] sm:$0xff]  ;;  %v113_v56 = vld [vmem:[#allocation2 + $0x190] sm:$0xff]  ;;  %v112_v60 = vld [vmem:[#allocation2 + $0x188] sm:$0xff] }
  0x21   :  { %327 = vmatpush3.msra.mxu0 %v71_v33  ;;  %365 = vmatpush3.msra.mxu1 %v103_v34  ;;  %v66_v53 = vld [vmem:[#allocation2 + $0x18] sm:$0xff]  ;;  %v65_v57 = vld [vmem:[#allocation2 + $0x10] sm:$0xff]  ;;  %v64_v61 = vld [vmem:[#allocation2 + $0x8] sm:$0xff] }
  0x22   :  { %328 = vmatprep.subr.mxu0 %v86_v35  ;;  %366 = vmatprep.subr.mxu1 %v118_v36  ;;  %v98_v54 = vld [vmem:[#allocation2 + $0x118] sm:$0xff]  ;;  %v97_v58 = vld [vmem:[#allocation2 + $0x110] sm:$0xff]  ;;  %v96_v62 = vld [vmem:[#allocation2 + $0x108] sm:$0xff] }
  0x23   :  { %329 = vmatpush3.msra.mxu0 %v70_v37  ;;  %367 = vmatpush3.msra.mxu1 %v102_v38  ;;  %v79_v63 = vld [vmem:[#allocation2 + $0x80] sm:$0xff] }
  0x24   :  { %330 = vmatprep.subr.mxu0 %v85_v39  ;;  %368 = vmatprep.subr.mxu1 %v117_v40  ;;  %v111_v0 = vld [vmem:[#allocation2 + $0x180] sm:$0xff] }
  0x25   :  { %331 = vmatpush3.msra.mxu0 %v69_v41  ;;  %369 = vmatpush3.msra.mxu1 %v101_v42  ;;  %v63_v1 = vld [vmem:[#allocation2] sm:$0xff] }
  0x26   :  { %332 = vmatprep.subr.mxu0 %v84_v43  ;;  %370 = vmatprep.subr.mxu1 %v116_v44  ;;  %v95_v2 = vld [vmem:[#allocation2 + $0x100] sm:$0xff] }
  0x27   :  { %333 = vmatpush3.msra.mxu0 %v68_v45  ;;  %371 = vmatpush3.msra.mxu1 %v100_v46 }
  0x28   :  { %334 = vmatprep.subr.mxu0 %v83_v47  ;;  %372 = vmatprep.subr.mxu1 %v115_v48 }
  0x29   :  { %335 = vmatpush3.msra.mxu0 %v67_v49  ;;  %373 = vmatpush3.msra.mxu1 %v99_v50 }
  0x2a   :  { %336 = vmatprep.subr.mxu0 %v82_v51  ;;  %374 = vmatprep.subr.mxu1 %v114_v52 }
  0x2b   :  { %337 = vmatpush3.msra.mxu0 %v66_v53  ;;  %375 = vmatpush3.msra.mxu1 %v98_v54 }
  0x2c   :  { %338 = vmatprep.subr.mxu0 %v81_v55  ;;  %376 = vmatprep.subr.mxu1 %v113_v56 }
  0x2d   :  { %339 = vmatpush3.msra.mxu0 %v65_v57  ;;  %377 = vmatpush3.msra.mxu1 %v97_v58 }
  0x2e   :  { %340 = vmatprep.subr.mxu0 %v80_v59  ;;  %378 = vmatprep.subr.mxu1 %v112_v60 }
  0x2f   :  { %341 = vmatpush3.msra.mxu0 %v64_v61  ;;  %379 = vmatpush3.msra.mxu1 %v96_v62 }
  0x30   :  { %342 = vmatprep.subr.mxu0 %v79_v63  ;;  %380 = vmatprep.subr.mxu1 %v111_v0 }
  0x31   :  { %343 = vmatpush3.msra.mxu0 %v63_v1  ;;  %381 = vmatpush3.msra.mxu1 %v95_v2 }
  0x8b   :  { %v35_v8 = vpop.permute.xlu0 %34 }
  0x8c   :  { %vm40_vm0 = vcmp.eq.s32.totalorder %v30_v5, %v35_v8  ;;  %vm42_vm1 = vcmp.eq.s32.totalorder %v32_v6, %v35_v8  ;;  %vm39_vm2 = vcmp.eq.s32.totalorder %v29_v4, %v35_v8  ;;  %vm41_vm3 = vcmp.eq.s32.totalorder %v31_v7, %v35_v8 }
  0x8d   :  { %304 = vmatprep.mubr.msk.f32.mxu0 %vm40_vm0, %v443_v9  ;;  %308 = vmatprep.mubr.msk.f32.mxu1 %vm42_vm1, %v443_v9 }
  0x8e   :  { %305 = vmatmul.mubr.msk.f32.vlgmr.msra.gmra.mxu0 %vm39_vm2, %v443_v9  ;;  %309 = vmatmul.mubr.msk.f32.vlgmr.msra.gmra.mxu1 %vm41_vm3, %v443_v9 }
  0x90   :  { %v38_v10 = vpop.permute.xlu0 %37 }
  0x91   :  { %vm44_vm4 = vcmp.eq.s32.totalorder %v30_v5, %v38_v10  ;;  %vm46_vm5 = vcmp.eq.s32.totalorder %v32_v6, %v38_v10  ;;  %vm43_vm6 = vcmp.eq.s32.totalorder %v29_v4, %v38_v10  ;;  %vm45_vm7 = vcmp.eq.s32.totalorder %v31_v7, %v38_v10 }
  0x92   :  { %306 = vmatprep.mubr.msk.f32.mxu0 %vm44_vm4, %v443_v9  ;;  %310 = vmatprep.mubr.msk.f32.mxu1 %vm46_vm5, %v443_v9 }
  0x93   :  { %307 = vmatmul.mubr.msk.f32.gmra.mxu0 %vm43_vm6, %v443_v9  ;;  %311 = vmatmul.mubr.msk.f32.gmra.mxu1 %vm45_vm7, %v443_v9 }
 0x14e   :  { %v344_v11 = vpop.f32.mrf.mxu0  ;;  %v382_v12 = vpop.f32.mrf.mxu1 }
 0x150   :  { %v345_v13 = vpop.f32.mrf.mxu0  ;;  %v383_v14 = vpop.f32.mrf.mxu1 }
 0x151   :  { %v346_v15 = vadd.f32 %v345_v13, %v344_v11  ;;  %v384_v16 = vadd.f32 %v383_v14, %v382_v12 }
 0x153   :  { %v347_v17 = vpop.f32.mrf.mxu0  ;;  %v385_v18 = vpop.f32.mrf.mxu1  ;;  %v269_v19 = vadd.f32 %v384_v16, %v346_v15 }
 0x155   :  { %v348_v20 = vpop.f32.mrf.mxu0  ;;  %v386_v21 = vpop.f32.mrf.mxu1  ;;  %277 = vst [vmem:[#allocation5] sm:$0xff] %v269_v19 }
 0x156   :  { %v349_v22 = vadd.f32 %v348_v20, %v347_v17  ;;  %v387_v23 = vadd.f32 %v386_v21, %v385_v18 }
 0x158   :  { %v274_v24 = vadd.f32 %v387_v23, %v349_v22 }
 0x15a   :  { %278 = vst [vmem:[#allocation5 + $0x8] sm:$0xff] %v274_v24 }
 0x15b   :  { %426 = shalt.err (!%p423_p9)
}
 0x15c   :  { %290 = dma.vmem_to_hbm [thread:$0]  %s285_s1, 256, %s480_s2, [#allocation4], %s440_s12, %s440_s12, %s441_s13  }
 0x15d   :  { %437 = dma.done.wait [#allocation4], 256  }
 0x15e   :  { %438 = vsyncadd [#allocation4], 4294967040 }
 0x15f   :  { %294 = vsyncpa [#allocation3], 1 }
 0x160   :  { %295 = vsyncpa [#allocation4], 1 }

</bundles_post_ra>
